<compile_context>
chip_gen: v6e
topology: v6e:2x2x1
jax: 0.10.0
libtpu: 0.0.40
codegen_flags: <defaults>
</compile_context>

<pallas_src>
import jax
import jax.numpy as jnp
from jax.experimental import pallas as pl
from jax.experimental.pallas import tpu as pltpu


def _receiver1_kernel(inp_cm_ref, w_aug_ref, x_ref, out_ref):
    # inp_cm_ref: (B, C, N)   channel-major features, C = 1 + ids, channel 0 = label
    # w_aug_ref:  (hidden, ids + 1)  columns = [W | bias]
    # x_ref:      (B, hidden)
    # out_ref:    (B, N)
    x = x_ref[...]                                                    # (B, hidden)

    # Tiny preamble dot: v[:, :ids] = x @ W, v[:, ids] = bias . x.
    # Latency-bound, ~0.1% MXU utilization — intentionally left unpadded.
    v = jnp.dot(x, w_aug_ref[...], preferred_element_type=jnp.float32)  # (B, ids+1)

    inp = inp_cm_ref[...].astype(jnp.float32)                         # (B, C, N), f32 math
    C = inp.shape[1]
    ids = C - 1

    # energy[b, n] = sum_i feats[b, n, i] * (x @ W)[b, i] + (bias . x)[b]
    # Static unroll over channels: each term is a lane-dense (B, N) FMA plane.
    # Channel 0 (the label) is skipped at zero cost (sublane index, no lane slice).
    acc = None
    for c in range(1, C):
        term = inp[:, c, :] * v[:, c - 1:c]                           # (B, N) * (B, 1)
        acc = term if acc is None else acc + term
    energy = acc + v[:, ids:ids + 1]                                  # + bias . x

    out_ref[...] = energy.astype(out_ref.dtype)                       # single lane-dense store


def receiver1_forward(x, _input, weight, bias):
    """x: (B, hidden) f32 (softmaxed message), _input: (B, N, 1+ids) f32/bf16,
    weight: (hidden, ids), bias: (hidden,).  Returns energies (B, N) f32."""
    B, hidden = x.shape
    N = _input.shape[1]
    C = _input.shape[2]                      # 1 + ids (label column + features)
    ids = weight.shape[1]
    assert C == ids + 1 and ids >= 1

    # Fold bias into the weight: one preamble dot instead of dot + XLU reduce.
    w_aug = jnp.concatenate(
        [weight.astype(jnp.float32), bias.astype(jnp.float32)[:, None]], axis=1)  # (hidden, ids+1)

    # Channel-major features: N on lanes -> lane-dense loads / FMAs / output store.
    # At production scale the data pipeline should emit this layout directly
    # (the wrapper transpose here is negligible at toy shapes).
    inp_cm = jnp.transpose(_input, (0, 2, 1))                         # (B, C, N)

    itemsize_in = jnp.dtype(_input.dtype).itemsize
    flops = int(2 * B * hidden * (ids + 1) + 2 * B * N * ids)
    bytes_accessed = int(itemsize_in * B * C * N
                         + 4 * (hidden * (ids + 1) + B * hidden + B * N))

    out = pl.pallas_call(
        _receiver1_kernel,
        out_shape=jax.ShapeDtypeStruct((B, N), jnp.float32),
        # Single grid step: every operand is one whole-array block in VMEM.
        in_specs=[
            pl.BlockSpec(memory_space=pltpu.MemorySpace.VMEM),   # inp_cm (B, C, N)
            pl.BlockSpec(memory_space=pltpu.MemorySpace.VMEM),   # w_aug  (hidden, ids+1)
            pl.BlockSpec(memory_space=pltpu.MemorySpace.VMEM),   # x      (B, hidden)
        ],
        out_specs=pl.BlockSpec(memory_space=pltpu.MemorySpace.VMEM),
        cost_estimate=pl.CostEstimate(
            flops=flops, transcendentals=0, bytes_accessed=bytes_accessed),
    )(inp_cm, w_aug, x)

    # torch .squeeze(): (B, N, 1) -> (B, N). (If B==1 or N==1 torch would also
    # drop that dim — delegated to the caller.)
    return out


def receiver1_reference(x, _input, weight, bias):
    # f32 HIGHEST precision so the reference matches the kernel's accumulation.
    feats = _input[:, :, 1:].astype(jnp.float32)
    emb = jnp.einsum("bni,hi->bnh", feats, weight,
                     precision=jax.lax.Precision.HIGHEST) + bias
    return jnp.einsum("bnh,bh->bn", emb, x,
                      precision=jax.lax.Precision.HIGHEST)


# TODO(synk): ContinousGame.sender, ContinousGame.loss and the rest_info
# host-side .item() aggregation are opaque callables / host logic with no
# Pallas equivalent; only the Receiver1 energy computation is kernelized.

if __name__ == "__main__":
    key = jax.random.PRNGKey(0)
    B, N, hidden, ids = 2, 8, 32, 3

    k1, k2, k3, k4 = jax.random.split(key, 4)
    # Deterministic synthetic parameters (shapes from nn.Linear(ids, hidden)).
    weight = jax.random.normal(k1, (hidden, ids), dtype=jnp.float32) * 0.1
    bias = jax.random.normal(k2, (hidden,), dtype=jnp.float32) * 0.1

    # The game softmaxes the sender message before calling the receiver.
    x = jax.nn.softmax(jax.random.normal(k3, (B, hidden), dtype=jnp.float32), axis=1)
    _input = jax.random.normal(k4, (B, N, 1 + ids), dtype=jnp.float32)

    out = receiver1_forward(x, _input, weight, bias)
    jax.block_until_ready(out)
    ref = receiver1_reference(x, _input, weight, bias)
    assert out.shape == (B, N)
    assert jnp.allclose(out, ref, atol=1e-4, rtol=1e-4)

    # bf16 feature path (halves HBM traffic at real N); math stays f32 in-kernel.
    _input_bf16 = _input.astype(jnp.bfloat16)
    out_bf = receiver1_forward(x, _input_bf16, weight, bias)
    jax.block_until_ready(out_bf)
    ref_bf = receiver1_reference(x, _input_bf16.astype(jnp.float32), weight, bias)
    assert jnp.allclose(out_bf, ref_bf, atol=1e-4, rtol=1e-4)

    print("KERNEL_OK")
</pallas_src>

<mosaic_0001>
module attributes {stable_mosaic.version = 11 : i64} {
  func.func @_receiver1_kernel(%arg0: memref<2x4x8xf32, #tpu.memory_space<vmem>>, %arg1: memref<32x4xf32, #tpu.memory_space<vmem>>, %arg2: memref<2x32xf32, #tpu.memory_space<vmem>>, %arg3: memref<2x8xf32, #tpu.memory_space<vmem>>) attributes {dimension_semantics = [], scalar_prefetch = 0 : i64, scratch_operands = 0 : i64, tpu.core_type = #tpu.core_type<tc>} {
    %c0 = arith.constant 0 : index
    %c0_0 = arith.constant 0 : index
    %0 = vector.load %arg2[%c0, %c0_0] : memref<2x32xf32, #tpu.memory_space<vmem>>, vector<2x32xf32>
    %c0_1 = arith.constant 0 : index
    %c0_2 = arith.constant 0 : index
    %1 = vector.load %arg1[%c0_1, %c0_2] : memref<32x4xf32, #tpu.memory_space<vmem>>, vector<32x4xf32>
    %cst = arith.constant dense<0.000000e+00> : vector<2x4xf32>
    %2 = tpu.matmul %0, %1, %cst {dimension_numbers = #tpu.dot_dimension_numbers<[1], [0], [0], [1], [0, 0, 1, 1], [], []>} : vector<2x32xf32>, vector<32x4xf32>, vector<2x4xf32> -> vector<2x4xf32>
    %c0_3 = arith.constant 0 : index
    %c0_4 = arith.constant 0 : index
    %c0_5 = arith.constant 0 : index
    %3 = vector.load %arg0[%c0_3, %c0_4, %c0_5] : memref<2x4x8xf32, #tpu.memory_space<vmem>>, vector<2x4x8xf32>
    %4 = vector.extract_strided_slice %3 {offsets = [0, 1, 0], sizes = [2, 1, 8], strides = [1, 1, 1]} : vector<2x4x8xf32> to vector<2x1x8xf32>
    %5 = vector.shape_cast %4 : vector<2x1x8xf32> to vector<2x8xf32>
    %6 = vector.extract_strided_slice %2 {offsets = [0, 0], sizes = [2, 1], strides = [1, 1]} : vector<2x4xf32> to vector<2x1xf32>
    %7 = vector.broadcast %6 : vector<2x1xf32> to vector<2x8xf32>
    %8 = arith.mulf %5, %7 : vector<2x8xf32>
    %9 = vector.extract_strided_slice %3 {offsets = [0, 2, 0], sizes = [2, 1, 8], strides = [1, 1, 1]} : vector<2x4x8xf32> to vector<2x1x8xf32>
    %10 = vector.shape_cast %9 : vector<2x1x8xf32> to vector<2x8xf32>
    %11 = vector.extract_strided_slice %2 {offsets = [0, 1], sizes = [2, 1], strides = [1, 1]} : vector<2x4xf32> to vector<2x1xf32>
    %12 = vector.broadcast %11 : vector<2x1xf32> to vector<2x8xf32>
    %13 = arith.mulf %10, %12 : vector<2x8xf32>
    %14 = arith.addf %8, %13 : vector<2x8xf32>
    %15 = vector.extract_strided_slice %3 {offsets = [0, 3, 0], sizes = [2, 1, 8], strides = [1, 1, 1]} : vector<2x4x8xf32> to vector<2x1x8xf32>
    %16 = vector.shape_cast %15 : vector<2x1x8xf32> to vector<2x8xf32>
    %17 = vector.extract_strided_slice %2 {offsets = [0, 2], sizes = [2, 1], strides = [1, 1]} : vector<2x4xf32> to vector<2x1xf32>
    %18 = vector.broadcast %17 : vector<2x1xf32> to vector<2x8xf32>
    %19 = arith.mulf %16, %18 : vector<2x8xf32>
    %20 = arith.addf %14, %19 : vector<2x8xf32>
    %21 = vector.extract_strided_slice %2 {offsets = [0, 3], sizes = [2, 1], strides = [1, 1]} : vector<2x4xf32> to vector<2x1xf32>
    %22 = vector.broadcast %21 : vector<2x1xf32> to vector<2x8xf32>
    %23 = arith.addf %20, %22 : vector<2x8xf32>
    %c0_6 = arith.constant 0 : index
    %c0_7 = arith.constant 0 : index
    %24 = vector.load %arg3[%c0_6, %c0_7] : memref<2x8xf32, #tpu.memory_space<vmem>>, vector<2x8xf32>
    tpu.vector_store %arg3[%c0_6, %c0_7], %23 {strides = array<i32>} : memref<2x8xf32, #tpu.memory_space<vmem>>, vector<2x8xf32>,
    return
  }
}

</mosaic_0001>

<bundles_post_ra>
// kernel: tpu_custom_call.1
= control target key start
LH: loop header
LB: loop body
LE: loop exit
PB: predicated region body
PF: predicated region fallthrough
CT: control target
= control target key end

     0   :  { %v220_v1 = vmov 0.0   ;;  %vm221_vm0 = vmmov 0   ;;  %v222_v3 = vmov 1   ;;  %s271_s0 = inlined_call_operand.vmem [shape: f32[2,4,8], index: 0, kind: input, shape index: {}]   ;;  %s272_s1 = inlined_call_operand.vmem [shape: f32[32,4], index: 1, kind: input, shape index: {}]   ;;  %s273_s2 = inlined_call_operand.vmem [shape: f32[2,32], index: 2, kind: input, shape index: {}]   ;;  %s274_s3 = inlined_call_operand.hbm [shape: f32[2,8], index: 3, kind: output, shape index: {}]  }
   0x1   :  { %v19_v0 = vld [vmem:[%s272_s1 + $0x18] sm:$0xff]  ;;  %175 = vmatprep.subr.mxu0 %v220_v1  ;;  %v18_v2 = vld [vmem:[%s272_s1 + $0x10] sm:$0xff]  ;;  %183 = vmatprep.mubr.msk.f32.mxu0 %vm221_vm0, %v220_v1 }
   0x2   :  { %176 = vmatpush3.msra.mxu0 %v19_v0  ;;  %193 = vset.pattern.permute.xlu0 %v222_v3 }
   0x3   :  { %8 = vsyncpa [#allocation3], 0  ;;  %177 = vmatprep.subr.mxu0 %v220_v1  ;;  %v17_v4 = vld [vmem:[%s272_s1 + $0x8] sm:$0xff]  ;;  %v223_v5 = vmov 0   ;;  %v16_v6 = vld [vmem:[%s272_s1] sm:$0xff]  ;;  %vm20_vm1 = vcmask 261120  }
   0x4   :  { %195 = vset.pattern.permute.xlu1 %v223_v5  ;;  %178 = vmatpush3.msra.mxu0 %v18_v2  ;;  %v15_v7 = vld [vmem:[%s273_s2] sm:$0x3]  ;;  %v224_v10 = vmov 3   ;;  %v225_v11 = vmov 2   ;;  %v95_v17 = vld [vmem:[%s271_s0 + $0x4] sm:$0xf] }
   0x5   :  { %179 = vmatprep.subr.mxu0 %v220_v1  ;;  %v94_v12 = vld [vmem:[%s271_s0] sm:$0xf]  ;;  %s226_s0 = smov [#allocation2]   ;;  %vm150_vm2 = vcmask 1042434   ;;  %vm153_vm3 = vcmask 59393  }
   0x6   :  { %180 = vmatpush3.msra.mxu0 %v17_v4  ;;  %s161_s24 = sshll.u32 %s226_s0, 4  ;;  %s162_s24 = int_to_ptr.vmem [resolvable:$true] %s161_s24 }
   0x7   :  { %181 = vmatprep.subr.mxu0 %v220_v1  ;;  %s198_s25 = scalar_lea.vmem %s162_s24, 32  ;;  %p203_p1 = scmp.lt.s32.totalorder %s162_s24, %s162_s24 }
   0x8   :  { %182 = vmatpush3.msra.mxu0 %v16_v6  ;;  %p199_p0 = scmp.ne.s32.totalorder %s162_s24, %s198_s25  ;;  %p204_p2 = scmp.lt.s32.totalorder %s198_s25, %s198_s25 }
   0x9   :  { %184 = vmatmul.mubr.msk.f32.vlgmr.msra.gmra.mxu0 %vm20_vm1, %v15_v7 }
   0xa   :  { %p205_p3 = por %p204_p2, %p203_p1 }
   0xc   :  { %p206_p4 = pnand %p205_p3, %p199_p0 }
  0xc9   :  { %v90_v8 = vpop.f32.mrf.mxu0 }
  0xca   :  { %98 = vperm.xlu1 %195, %v90_v8   ;;  %106 = vperm.xlu0 %193, %v90_v8  }
  0xcb   :  { %v185_v9 = vpop.f32.mrf.mxu0 }
  0xce   :  { %196 = vset.pattern.permute.xlu1 %v224_v10  ;;  %194 = vset.pattern.permute.xlu0 %v225_v11 }
  0xcf   :  { %140 = vperm.xlu1 %196, %v90_v8   ;;  %123 = vperm.xlu0 %194, %v90_v8  }
  0xd3   :  { %197 = vset.pattern.permute.xlu0 %v224_v10 }
 0x145   :  { %v107_v13 = vpop.permute.xlu0 %106  ;;  %v99_v14 = vpop.permute.xlu1 %98 }
 0x146   :  { %v108_v15 = vrot.slane %v107_v13, 6  ;;  %v109_v16 = vrot.slane %v107_v13, 7  ;;  %v100_v20 = vrot.slane %v99_v14, 7  ;;  %v104_v27 = vmul.f32 %v99_v14, %v95_v17 }
 0x148   :  { %v112_v18 = vmul.f32 %v108_v15, %v94_v12  ;;  %v113_v19 = vmul.f32 %v109_v16, %v95_v17  ;;  %v103_v26 = vmul.f32 %v100_v20, %v94_v12 }
 0x14a   :  { %v124_v21 = vpop.permute.xlu0 %123  ;;  %v116_v22 = vrot.slane %v112_v18, 1  ;;  %v117_v23 = vrot.slane %v113_v19, 1  ;;  %v141_v34 = vpop.permute.xlu1 %140 }
 0x14b   :  { %v125_v24 = vrot.slane %v124_v21, 5  ;;  %v126_v25 = vrot.slane %v124_v21, 6  ;;  %v142_v37 = vrot.slane %v141_v34, 7 }
 0x14c   :  { %v120_v30 = vadd.f32 %v116_v22, %v103_v26  ;;  %v121_v31 = vadd.f32 %v117_v23, %v104_v27 }
 0x14d   :  { %v129_v28 = vmul.f32 %v125_v24, %v94_v12  ;;  %v130_v29 = vmul.f32 %v126_v25, %v95_v17 }
 0x14f   :  { %v133_v32 = vrot.slane %v129_v28, 2  ;;  %v134_v33 = vrot.slane %v130_v29, 2 }
 0x151   :  { %v137_v35 = vadd.f32 %v133_v32, %v120_v30  ;;  %v138_v36 = vadd.f32 %v134_v33, %v121_v31 }
 0x153   :  { %v146_v38 = vadd.f32 %v141_v34, %v138_v36  ;;  %v145_v39 = vadd.f32 %v142_v37, %v137_v35 }
 0x155   :  { %v149_v40 = vrot.slane %v146_v38, 7 }
 0x157   :  { %v151_v41 = vsel %vm150_vm2, %v149_v40, %v145_v39 }
 0x158   :  { %154 = vst.msk [vmem:[#allocation2 - $0x1] sm:$0x6] %vm153_vm3, %v151_v41 }
 0x159   :  { %209 = shalt.err (!%p206_p4)
}
 0x15a   :  { %164 = dma.vmem_to_hbm [thread:$0]  %s162_s24, 32, %s274_s3, [#allocation3]  }
 0x15b   :  { %218 = dma.done.wait [#allocation3], 32  }
 0x15c   :  { %219 = vsyncadd [#allocation3], 4294967264 }
 0x15d   :  { %168 = vsyncpa [#allocation3], 1 }

</bundles_post_ra>
